<compile_context>
chip_gen: v5e
topology: v5e:2x2
jax: 0.10.0
libtpu: 0.0.40
codegen_flags: <defaults>
</compile_context>

<pallas_src>
import itertools
import functools
import numpy as np
import jax
import jax.numpy as jnp
from jax.experimental import pallas as pl
from jax.experimental.pallas import tpu as pltpu  # noqa: F401  (kept for TPU-specific extensions)


# -------------------- synthetic config (stands in for CFG) --------------------
class CFG:
    system_size = 3                 # target_size = 3  -> Identity of dim 2^3 = 8
    extra_ancilla = True            # generator size = 3 + 1 = 4 -> unitary 16x16
    do_ancilla_1q_gates = True
    ancilla_topology = 'ansatz'
    ancilla_connect_to = None
    start_ancilla_gates_randomly = True
    gen_ansatz = 'ZZ_X_Z'
    gen_layers = 2
    target_hamiltonian = 'synthetic'


# -------------------- quantum-circuit construction (host glue) --------------------
_I2 = np.eye(2, dtype=np.complex64)
_X = np.array([[0, 1], [1, 0]], dtype=np.complex64)
_Y = np.array([[0, -1j], [1j, 0]], dtype=np.complex64)
_Z = np.array([[1, 0], [0, -1]], dtype=np.complex64)
_PAULI = {'X': _X, 'Y': _Y, 'Z': _Z}


class QuantumGate:
    def __init__(self, name, qubit1, qubit2=None, angle=0.0):
        self.name = name
        self.qubit1 = qubit1
        self.qubit2 = qubit2
        self.angle = float(angle)

    def matrix(self):
        c = np.cos(self.angle / 2.0)
        s = np.sin(self.angle / 2.0)
        if self.qubit2 is None:
            p = _PAULI[self.name]
            return (c * _I2 - 1j * s * p).astype(np.complex64)
        p = np.kron(_PAULI[self.name[0]], _PAULI[self.name[1]])
        return (c * np.eye(4, dtype=np.complex64) - 1j * s * p).astype(np.complex64)


def embed_gate(gate_mat, qubits, n):
    """Embed a 1- or 2-qubit gate into the full 2^n unitary (qubit 0 = leftmost kron factor)."""
    k = len(qubits)
    d = 2 ** n
    gt = np.asarray(gate_mat, dtype=np.complex64).reshape([2] * k + [2] * k)
    u = np.eye(d, dtype=np.complex64).reshape([2] * n + [d])
    t = np.tensordot(gt, u, axes=(list(range(k, 2 * k)), list(qubits)))
    remaining = [q for q in range(n) if q not in qubits]
    order = list(qubits) + remaining
    inv = [order.index(q) for q in range(n)]
    t = np.transpose(t, inv + [n])
    return t.reshape(d, d)


def build_ansatz_gates(size, layers, ansatz_type, cfg):
    gates = []
    system_qubits = size - 1 if cfg.extra_ancilla else size
    if ansatz_type == 'ZZ_X_Z':
        for _ in range(layers):
            for i in range(system_qubits):
                gates.append(QuantumGate('X', i))
                gates.append(QuantumGate('Z', i))
            if cfg.extra_ancilla and cfg.do_ancilla_1q_gates:
                gates.append(QuantumGate('X', system_qubits))
                gates.append(QuantumGate('Z', system_qubits))
            for i in range(system_qubits - 1):
                gates.append(QuantumGate('ZZ', i, i + 1))
            if cfg.extra_ancilla:
                anc = system_qubits
                if cfg.ancilla_topology == 'total':
                    for i in range(system_qubits):
                        gates.append(QuantumGate('ZZ', i, anc))
                elif cfg.ancilla_topology in ('bridge', 'ansatz'):
                    ct = cfg.ancilla_connect_to if cfg.ancilla_connect_to is not None else system_qubits - 1
                    gates.append(QuantumGate('ZZ', ct, anc))
                    if cfg.ancilla_topology == 'bridge':
                        gates.append(QuantumGate('ZZ', 0, anc))
    elif ansatz_type == 'XX_YY_ZZ_Z':
        entg = ['XX', 'YY', 'ZZ']
        for _ in range(layers):
            for i in range(system_qubits):
                gates.append(QuantumGate('Z', i))
            if cfg.extra_ancilla and cfg.do_ancilla_1q_gates:
                gates.append(QuantumGate('Z', system_qubits))
            for i, g in itertools.product(range(system_qubits - 1), entg):
                gates.append(QuantumGate(g, i, i + 1))
            if cfg.extra_ancilla:
                anc = system_qubits
                if cfg.ancilla_topology == 'total':
                    for i, g in itertools.product(range(system_qubits), entg):
                        gates.append(QuantumGate(g, i, anc))
                elif cfg.ancilla_topology in ('bridge', 'ansatz'):
                    ct = cfg.ancilla_connect_to if cfg.ancilla_connect_to is not None else system_qubits - 1
                    for g in entg:
                        gates.append(QuantumGate(g, ct, anc))
                    if cfg.ancilla_topology == 'bridge':
                        for g in entg:
                            gates.append(QuantumGate(g, 0, anc))
    else:
        raise ValueError('Invalid type of ansatz specified.')
    return gates


def randomize_gates(gates, size, cfg, rng):
    anc = size - 1 if cfg.extra_ancilla else -1
    for g in gates:
        is_anc = anc != -1 and (g.qubit1 == anc or g.qubit2 == anc)
        if not is_anc or cfg.start_ancilla_gates_randomly:
            g.angle = float(rng.uniform(0.0, 2.0 * np.pi))


def ansatz_unitary(size, gates):
    d = 2 ** size
    u = np.eye(d, dtype=np.complex64)
    for g in gates:
        qubits = [g.qubit1] if g.qubit2 is None else [g.qubit1, g.qubit2]
        u = embed_gate(g.matrix(), qubits, size) @ u
    return u.astype(np.complex64)


# -------------------- Pallas kernel --------------------
# Complex block-diagonal matvec exploiting full_op = kron(I, U):
#   Y = X @ U^T, with X the (batch*blocks, k) row-matrix of per-block state slices.
# Real/imag planes are stacked along rows so the whole complex product is two real
# matmuls on the MXU (instead of four M=1 matmuls):
#   x2 = [X_r; X_i]        (2M, K)
#   P  = x2 @ U^T_r  -> rows [X_r U^T_r ; X_i U^T_r] = [rr ; ir]
#   Q  = x2 @ U^T_i  -> rows [X_r U^T_i ; X_i U^T_i] = [ri ; ii]
#   Y_r = rr - ii ,  Y_i = ri + ir
def _kron_apply_kernel(x2_ref, utr_ref, uti_ref, out_ref):
    x2 = x2_ref[...]                    # (2M, K) float32
    utr = utr_ref[...]                  # (K, K)  float32, real(U^T)
    uti = uti_ref[...]                  # (K, K)  float32, imag(U^T)
    p = jnp.dot(x2, utr, preferred_element_type=jnp.float32)
    q = jnp.dot(x2, uti, preferred_element_type=jnp.float32)
    m = x2_ref.shape[0] // 2            # static
    out_ref[...] = jnp.concatenate([p[:m] - q[m:],    # real part
                                    q[:m] + p[m:]],   # imag part
                                   axis=0)


@jax.jit
def _generator_apply(ut_real, ut_imag, state):
    """state: (D, B) complex64, D = blocks * K, U^T planes: (K, K) float32."""
    d, b = state.shape
    k = ut_real.shape[0]
    blocks = d // k
    m = b * blocks
    # (D, B) -> rows of per-block slices: row (batch, block) -> state[block*K:(block+1)*K, batch]
    xr = jnp.real(state).astype(jnp.float32).T.reshape(m, k)
    xi = jnp.imag(state).astype(jnp.float32).T.reshape(m, k)
    x2 = jnp.concatenate([xr, xi], axis=0)                       # (2M, K)

    out = pl.pallas_call(
        _kron_apply_kernel,
        out_shape=jax.ShapeDtypeStruct((2 * m, k), jnp.float32),
    )(x2, ut_real, ut_imag)

    yr = out[:m].reshape(b, d).T                                  # (D, B)
    yi = out[m:].reshape(b, d).T
    return (yr + 1j * yi).astype(jnp.complex64)


# -------------------- Generator --------------------
class Generator:
    def __init__(self, cfg=CFG):
        self.size = cfg.system_size + (1 if cfg.extra_ancilla else 0)
        self.target_size = cfg.system_size
        gates = build_ansatz_gates(self.size, cfg.gen_layers, cfg.gen_ansatz, cfg)
        # deterministic "uniform(0, 2*pi)" parameter init
        randomize_gates(gates, self.size, cfg, np.random.default_rng(1234))
        self.unitary = ansatz_unitary(self.size, gates)           # (2^size, 2^size) complex64
        # Precompute transposed real/imag float32 planes ONCE (never rebuilt per call),
        # and never materialize kron(I, U): the identity factor is handled by reshaping
        # the state into 2^target_size blocks of length 2^size.
        ut = self.unitary.T
        self.ut_real = jnp.asarray(np.real(ut), dtype=jnp.float32)   # (K, K)
        self.ut_imag = jnp.asarray(np.imag(ut), dtype=jnp.float32)   # (K, K)
        self.blocks = 2 ** self.target_size
        self.dim = self.blocks * (2 ** self.size)
        # TODO(synk): load_model_params / save_model_params are file-I/O glue with no
        # kernel equivalent and are intentionally omitted.

    def __call__(self, total_input_state):
        # forward: kron(Identity(target_size), ansatz()) @ total_input_state
        state = jnp.asarray(total_input_state, dtype=jnp.complex64)
        squeeze = state.ndim == 1
        if squeeze:
            state = state[:, None]
        out = _generator_apply(self.ut_real, self.ut_imag, state)   # (D, B)
        return out[:, 0] if squeeze else out


# -------------------- main --------------------
if __name__ == "__main__":
    gen = Generator(CFG)
    dim = 2 ** (gen.target_size + gen.size)                  # 2^(3+4) = 128

    key = jax.random.PRNGKey(0)
    kr, ki, kb = jax.random.split(key, 3)
    re = jax.random.normal(kr, (dim, 1), dtype=jnp.float32)
    im = jax.random.normal(ki, (dim, 1), dtype=jnp.float32)
    state = (re + 1j * im).astype(jnp.complex64)
    state = state / jnp.sqrt(jnp.sum(jnp.abs(state) ** 2))   # normalized state vector

    out = gen(state)
    out = jax.block_until_ready(out)

    # host reference against the explicitly materialized kron operator
    full_op_ref = np.kron(np.eye(2 ** gen.target_size, dtype=np.complex64), np.asarray(gen.unitary))
    ref = full_op_ref @ np.asarray(state)
    assert out.shape == state.shape and out.dtype == jnp.complex64
    np.testing.assert_allclose(np.asarray(out), ref, atol=1e-2, rtol=1e-2)

    # batched path (B = 8 independent states) — exercises the larger-M matmul
    bre = jax.random.normal(kb, (dim, 8), dtype=jnp.float32)
    bim = jax.random.normal(jax.random.fold_in(kb, 1), (dim, 8), dtype=jnp.float32)
    batch = (bre + 1j * bim).astype(jnp.complex64)
    batch = batch / jnp.sqrt(jnp.sum(jnp.abs(batch) ** 2, axis=0, keepdims=True))
    out_b = jax.block_until_ready(gen(batch))
    ref_b = full_op_ref @ np.asarray(batch)
    np.testing.assert_allclose(np.asarray(out_b), ref_b, atol=1e-2, rtol=1e-2)

    print("KERNEL_OK")
</pallas_src>

<mosaic_0001>
module attributes {stable_mosaic.version = 11 : i64} {
  func.func @_kron_apply_kernel(%arg0: memref<16x16xf32, #tpu.memory_space<vmem>>, %arg1: memref<16x16xf32, #tpu.memory_space<vmem>>, %arg2: memref<16x16xf32, #tpu.memory_space<vmem>>, %arg3: memref<16x16xf32, #tpu.memory_space<vmem>>) attributes {dimension_semantics = [], scalar_prefetch = 0 : i64, scratch_operands = 0 : i64, tpu.core_type = #tpu.core_type<tc>} {
    %c0 = arith.constant 0 : index
    %c0_0 = arith.constant 0 : index
    %0 = vector.load %arg0[%c0, %c0_0] : memref<16x16xf32, #tpu.memory_space<vmem>>, vector<16x16xf32>
    %c0_1 = arith.constant 0 : index
    %c0_2 = arith.constant 0 : index
    %1 = vector.load %arg1[%c0_1, %c0_2] : memref<16x16xf32, #tpu.memory_space<vmem>>, vector<16x16xf32>
    %c0_3 = arith.constant 0 : index
    %c0_4 = arith.constant 0 : index
    %2 = vector.load %arg2[%c0_3, %c0_4] : memref<16x16xf32, #tpu.memory_space<vmem>>, vector<16x16xf32>
    %cst = arith.constant dense<0.000000e+00> : vector<16x16xf32>
    %3 = tpu.matmul %0, %1, %cst {dimension_numbers = #tpu.dot_dimension_numbers<[1], [0], [0], [1], [0, 0, 1, 1], [], []>} : vector<16x16xf32>, vector<16x16xf32>, vector<16x16xf32> -> vector<16x16xf32>
    %cst_5 = arith.constant dense<0.000000e+00> : vector<16x16xf32>
    %4 = tpu.matmul %0, %2, %cst_5 {dimension_numbers = #tpu.dot_dimension_numbers<[1], [0], [0], [1], [0, 0, 1, 1], [], []>} : vector<16x16xf32>, vector<16x16xf32>, vector<16x16xf32> -> vector<16x16xf32>
    %5 = vector.extract_strided_slice %3 {offsets = [0, 0], sizes = [8, 16], strides = [1, 1]} : vector<16x16xf32> to vector<8x16xf32>
    %6 = vector.extract_strided_slice %4 {offsets = [8, 0], sizes = [8, 16], strides = [1, 1]} : vector<16x16xf32> to vector<8x16xf32>
    %7 = arith.subf %5, %6 : vector<8x16xf32>
    %8 = vector.extract_strided_slice %4 {offsets = [0, 0], sizes = [8, 16], strides = [1, 1]} : vector<16x16xf32> to vector<8x16xf32>
    %9 = vector.extract_strided_slice %3 {offsets = [8, 0], sizes = [8, 16], strides = [1, 1]} : vector<16x16xf32> to vector<8x16xf32>
    %10 = arith.addf %8, %9 : vector<8x16xf32>
    %11 = tpu.concatenate %7, %10 in 0 : vector<8x16xf32>, vector<8x16xf32> -> vector<16x16xf32>
    %c0_6 = arith.constant 0 : index
    %c0_7 = arith.constant 0 : index
    %12 = vector.load %arg3[%c0_6, %c0_7] : memref<16x16xf32, #tpu.memory_space<vmem>>, vector<16x16xf32>
    tpu.vector_store %arg3[%c0_6, %c0_7], %11 {strides = array<i32>} : memref<16x16xf32, #tpu.memory_space<vmem>>, vector<16x16xf32>,
    return
  }
}

</mosaic_0001>

<bundles_post_ra>
// kernel: custom-call.1
= control target key start
LH: loop header
LB: loop body
LE: loop exit
PB: predicated region body
PF: predicated region fallthrough
CT: control target
= control target key end

     0   :  { %s56_s0 = inlined_call_operand.hbm [shape: c64[128,1], index: 0, kind: input, shape index: {}]   ;;  %s57_s1 = inlined_call_operand.vmem [shape: f32[128,1], index: 1, kind: output, shape index: {}]  }
   0x1   :  { %s2_s8 = scalar_lea.hbm %s56_s0, 1 }
   0x2   :  { %3 = vsyncpa [#allocation0], 0  ;;  %s5_s9 = sshll.u32 %s2_s8, 4  ;;  %s7_s12 = sshll.u32 %s57_s1, 4  ;;  %s6_s9 = int_to_ptr.hbm [resolvable:$true] %s5_s9  ;;  %s8_s12 = int_to_ptr.vmem [resolvable:$true] %s7_s12 }
   0x3   :  { %10 = dma.hbm_to_vmem [thread:$0]  %s6_s9, 16, %s8_s12, [#allocation0] }
   0x4   :  { %38 = dma.done.wait [#allocation0], 16  }
   0x5   :  { %39 = vsyncadd [#allocation0], 4294967280 }
   0x6   :  { %13 = vsyncpa [#allocation0], 1 }

// kernel: custom-call
= control target key start
LH: loop header
LB: loop body
LE: loop exit
PB: predicated region body
PF: predicated region fallthrough
CT: control target
= control target key end

     0   :  { %2 = vsyncpa [#allocation0], 0  ;;  %s55_s0 = inlined_call_operand.hbm [shape: c64[128,1], index: 0, kind: input, shape index: {}]   ;;  %s56_s1 = inlined_call_operand.vmem [shape: f32[128,1], index: 1, kind: output, shape index: {}]  }
   0x1   :  { %s4_s8 = sshll.u32 %s55_s0, 4  ;;  %s6_s11 = sshll.u32 %s56_s1, 4  ;;  %s5_s8 = int_to_ptr.hbm [resolvable:$true] %s4_s8  ;;  %s7_s11 = int_to_ptr.vmem [resolvable:$true] %s6_s11 }
   0x2   :  { %9 = dma.hbm_to_vmem [thread:$0]  %s5_s8, 16, %s7_s11, [#allocation0] }
   0x3   :  { %37 = dma.done.wait [#allocation0], 16  }
   0x4   :  { %38 = vsyncadd [#allocation0], 4294967280 }
   0x5   :  { %12 = vsyncpa [#allocation0], 1 }

// kernel: custom-call.2
= control target key start
LH: loop header
LB: loop body
LE: loop exit
PB: predicated region body
PF: predicated region fallthrough
CT: control target
= control target key end

     0   :  { %s105_s0 = inlined_call_operand.vmem [shape: f32[128,1], index: 0, kind: input, shape index: {}]   ;;  %s106_s1 = inlined_call_operand.vmem [shape: f32[128,1], index: 1, kind: input, shape index: {}]   ;;  %s107_s2 = inlined_call_operand.hbm [shape: c64[128,1], index: 2, kind: output, shape index: {}]  }
   0x1   :  { %s3_s11 = scalar_lea.hbm %s107_s2, 1 }
   0x2   :  { %4 = vsyncpa [#allocation0], 0  ;;  %s6_s14 = sshll.u32 %s105_s0, 4  ;;  %s8_s17 = sshll.u32 %s107_s2, 4  ;;  %s7_s14 = int_to_ptr.vmem [resolvable:$true] %s6_s14  ;;  %s9_s17 = int_to_ptr.hbm [resolvable:$true] %s8_s17 }
   0x3   :  { %11 = dma.vmem_to_hbm [thread:$0]  %s7_s14, 16, %s9_s17, [#allocation0] }
   0x4   :  { %74 = dma.done.wait [#allocation0], 16  }
   0x5   :  { %75 = vsyncadd [#allocation0], 4294967280 }
   0x6   :  { %14 = vsyncpa [#allocation0], 1 }
   0x7   :  { %15 = vsyncpa [#allocation1], 0  ;;  %s17_s20 = sshll.u32 %s106_s1, 4  ;;  %s19_s21 = sshll.u32 %s3_s11, 4  ;;  %s18_s20 = int_to_ptr.vmem [resolvable:$true] %s17_s20  ;;  %s20_s21 = int_to_ptr.hbm [resolvable:$true] %s19_s21 }
   0x8   :  { %22 = dma.vmem_to_hbm [thread:$0]  %s18_s20, 16, %s20_s21, [#allocation1] }
   0x9   :  { %76 = dma.done.wait [#allocation1], 16  }
   0xa   :  { %77 = vsyncadd [#allocation1], 4294967280 }
   0xb   :  { %25 = vsyncpa [#allocation1], 1 }

// kernel: _generator_apply.1
= control target key start
LH: loop header
LB: loop body
LE: loop exit
PB: predicated region body
PF: predicated region fallthrough
CT: control target
= control target key end

     0   :  { %vm20_vm0 = vcmask 130048   ;;  %s139_s1 = inlined_call_operand.vmem [shape: f32[16,16], index: 1, kind: input, shape index: {}]   ;;  %s140_s2 = inlined_call_operand.vmem [shape: f32[16,16], index: 2, kind: input, shape index: {}]   ;;  %s141_s0 = inlined_call_operand.vmem [shape: f32[16,16], index: 0, kind: input, shape index: {}]   ;;  %s142_s3 = inlined_call_operand.vmem [shape: f32[16,16], index: 3, kind: output, shape index: {}]  }
   0x1   :  { %v17_v0 = vld [vmem:[%s139_s1 + $0x8] sm:$0xff]  ;;  %v16_v2 = vld [vmem:[%s139_s1] sm:$0xff] }
   0x2   :  { %v19_v1 = vld [vmem:[%s140_s2 + $0x8] sm:$0xff]  ;;  %85 = vmatpush.msra.mxu2 %v17_v0  ;;  %v18_v3 = vld [vmem:[%s140_s2] sm:$0xff]  ;;  %41 = vmatpush.msra.mxu0 %v17_v0 }
   0x3   :  { %87 = vmatpush.msra.mxu3 %v19_v1  ;;  %v15_v4 = vld [vmem:[%s141_s0 + $0x8] sm:$0xff]  ;;  %64 = vmatpush.msra.mxu1 %v19_v1  ;;  %v14_v5 = vld [vmem:[%s141_s0] sm:$0xff] }
   0x4   :  { %86 = vmatpush.msra.mxu2 %v16_v2  ;;  %42 = vmatpush.msra.mxu0 %v16_v2 }
   0x5   :  { %88 = vmatpush.msra.mxu3 %v18_v3  ;;  %82 = vmatmul.msk.f32.vlgmr.msra.gmra.mxu2 %vm20_vm0, %v15_v4 }
   0x6   :  { %84 = vmatmul.msk.f32.vlgmr.msra.gmra.mxu3 %vm20_vm0, %v15_v4  ;;  %65 = vmatpush.msra.mxu1 %v18_v3 }
   0x7   :  { %81 = vmatmul.msk.f32.vlgmr.msra.gmra.mxu0 %vm20_vm0, %v14_v5  ;;  %83 = vmatmul.msk.f32.vlgmr.msra.gmra.mxu1 %vm20_vm0, %v14_v5 }
  0x84   :  { %v44_v6 = vpop.f32.mrf.mxu0  ;;  %v67_v7 = vpop.f32.mrf.mxu1 }
  0x88   :  { %v47_v8 = vpop.f32.mrf.mxu2 }
  0x89   :  { %v70_v9 = vpop.f32.mrf.mxu3  ;;  %v74_v10 = vadd.f32 %v67_v7, %v47_v8 }
  0x8a   :  { %v73_v11 = vsub.f32 %v44_v6, %v70_v9 }
  0x8b   :  { %76 = vst.msk [vmem:[%s142_s3 + $0x8] sm:$0xff] %vm20_vm0, %v74_v10 }
  0x8c   :  { %75 = vst.msk [vmem:[%s142_s3] sm:$0xff] %vm20_vm0, %v73_v11 }

</bundles_post_ra>
